<compile_context>
chip_gen: v5e
topology: v5e:2x2
jax: 0.10.0
libtpu: 0.0.40
codegen_flags: <defaults>
</compile_context>

<pallas_src>
import jax
import jax.numpy as jnp
from jax.experimental import pallas as pl
from jax.experimental.pallas import tpu as pltpu


def _round_up(x, m):
    return (x + m - 1) // m * m


def _make_mlprf_kernel(out_dim, compute_dtype):
    """All tensors are batch-on-lanes: [feature, TB]."""

    def kernel(xn_ref, xc_ref, w1n_ref, t_ref, b1_ref, w2_ref, b2_ref,
               wh_ref, bh_ref, out_ref):
        tb = xn_ref.shape[1]
        total_vocab = t_ref.shape[1]
        n_cat = xc_ref.shape[0]

        # fc1, numeric part: [H1, nf] @ [nf, TB] (bf16 operands, f32 acc).
        acc = jnp.dot(w1n_ref[...], xn_ref[...],
                      preferred_element_type=jnp.float32)          # [H1, TB]

        # fc1, categorical part: fused (emb@W1)^T @ multihot(idx).
        # Indices already carry per-table offsets (disjoint vocab ranges), so
        # the multi-hot is a bool OR of the n_cat comparisons, cast once.
        idx = xc_ref[...]                                           # [n_cat, TB] i32
        iota = jax.lax.broadcasted_iota(jnp.int32, (total_vocab, tb), 0)
        hit = iota == idx[0:1, :]
        for i in range(1, n_cat):
            hit = jnp.logical_or(hit, iota == idx[i:i + 1, :])
        mh = hit.astype(compute_dtype)                              # [V, TB]
        acc = acc + jnp.dot(t_ref[...], mh,
                            preferred_element_type=jnp.float32)

        # f32 epilogue; cast to bf16 only immediately before each dot.
        h1 = jnp.tanh(acc + b1_ref[...])                            # [H1, TB] f32
        h2 = jnp.dot(w2_ref[...], h1.astype(compute_dtype),
                     preferred_element_type=jnp.float32)
        h2 = jnp.maximum(h2 + b2_ref[...], 0.0)                     # [H2, TB] f32

        # Fused NegativeBinomial head: one matmul, (mu | logit) rows.
        head = jnp.dot(wh_ref[...], h2.astype(compute_dtype),
                       preferred_element_type=jnp.float32) + bh_ref[...]
        rows = jax.lax.broadcasted_iota(jnp.int32, head.shape, 0)
        # softplus (stable: logaddexp(x, 0)) on mu rows, raw logits on the rest.
        out_ref[...] = jnp.where(rows < out_dim,
                                 jnp.logaddexp(head, 0.0), head)    # [2*out, TB]

    return kernel


def mlprf_forward(x_num, x_cat, params, *, tb=16384,
                  compute_dtype=jnp.bfloat16):
    """x_num: [B, num_features] f32, x_cat: [B, n_cat] int.

    params = (emb_tables, w1, b1, w2, b2, wmu, bmu, wlg, blg) with Linear
    weights stored [in_features, out_features], biases [1, out_features],
    so y = x @ W + b (equivalent to PyTorch's x @ W_pt.T + b)."""
    emb_tables, w1, b1, w2, b2, wmu, bmu, wlg, blg = params
    B, num_features = x_num.shape
    n_cat = len(emb_tables)
    d_emb = emb_tables[0].shape[1]
    out_dim = wmu.shape[1]
    cd = compute_dtype

    # Fold embedding gather + concat into fc1 (mathematically identical):
    #   emb_i[idx] @ W1_cat_i == onehot(idx) @ (emb_i @ W1_cat_i)
    # and transpose everything to batch-on-lanes.
    w1n_t = w1[:num_features].T                                   # [H1, nf]
    fused, idx_cols, off = [], [], 0
    for i, emb in enumerate(emb_tables):
        lo = num_features + i * d_emb
        fused.append(emb @ w1[lo:lo + d_emb])                     # [vocab_i, H1]
        # Clamp (PyTorch would raise on OOB) and pre-add the table offset.
        idx_cols.append(jnp.clip(x_cat[:, i], 0, emb.shape[0] - 1)
                        .astype(jnp.int32) + off)
        off += emb.shape[0]
    t_t = jnp.concatenate(fused, axis=0).T                        # [H1, sum_vocab]
    xc_t = jnp.stack(idx_cols, axis=0)                            # [n_cat, B] i32

    # Fused NB head (mu | logit) -> one matmul, one lane-dense output slab.
    wh_t = jnp.concatenate([wmu, wlg], axis=1).T                  # [2*out, H2]
    bh_t = jnp.concatenate([bmu, blg], axis=1).T                  # [2*out, 1]
    b1_t, b2_t, w2_t = b1.T, b2.T, w2.T

    # bf16 matmul operands; biases / accumulation / epilogue stay f32.
    xn_t = x_num.T.astype(cd)                                     # [nf, B]
    w1n_c, t_c, w2_c, wh_c = (a.astype(cd) for a in (w1n_t, t_t, w2_t, wh_t))

    # Batch tiling on the lane axis: TB multiple of 128.  If the whole batch
    # fits one tile, split in two so both v7x TensorCores get a grid step.
    b_floor = _round_up(B, 128)
    TB = min(_round_up(tb, 128), b_floor)
    if TB == b_floor and b_floor >= 256:
        TB = _round_up(b_floor // 2, 128)
    Bp = _round_up(B, TB)
    if Bp != B:
        xn_t = jnp.pad(xn_t, ((0, 0), (0, Bp - B)))
        # -1 matches no vocab row -> padded lanes contribute nothing.
        xc_t = jnp.pad(xc_t, ((0, 0), (0, Bp - B)), constant_values=-1)

    def stream(rows):            # batch-tiled, double-buffered operand
        return pl.BlockSpec((rows, TB), lambda i: (0, i))

    def resident(a):             # full array, VMEM-resident across grid steps
        return pl.BlockSpec(a.shape, lambda i: (0,) * a.ndim)

    kernel = _make_mlprf_kernel(out_dim, cd)

    out = pl.pallas_call(
        kernel,
        out_shape=jax.ShapeDtypeStruct((2 * out_dim, Bp), jnp.float32),
        grid=(Bp // TB,),
        in_specs=[stream(num_features), stream(n_cat),
                  resident(w1n_c), resident(t_c), resident(b1_t),
                  resident(w2_c), resident(b2_t),
                  resident(wh_c), resident(bh_t)],
        out_specs=stream(2 * out_dim),
        compiler_params=pltpu.CompilerParams(
            dimension_semantics=("parallel",),   # 2 TCs on v7x; no-op v5e/v6e
            vmem_limit_bytes=48 << 20),
    )(xn_t, xc_t, w1n_c, t_c, b1_t, w2_c, b2_t, wh_c, bh_t)

    r = out[:out_dim, :B].T
    p = out[out_dim:, :B].T
    return r, p


if __name__ == "__main__":
    # Small config consistent with the module.
    B = 200                      # batch (not a multiple of 128 -> exercises padding)
    num_features = 6             # numeric features
    max_embedding = [4, 5, 6]    # per-categorical max value (vocab = max+1)
    dim_embedding = 2
    input_size = num_features + len(max_embedding) * dim_embedding   # 12
    hidden1, hidden2, out_dim = 32, 16, 2

    key = jax.random.PRNGKey(0)
    ks = jax.random.split(key, 12)

    # Deterministic synthetic parameters.
    emb_tables = tuple(
        jax.random.normal(ks[i], (m + 1, dim_embedding), jnp.float32) * 0.5
        for i, m in enumerate(max_embedding))
    w1  = jax.random.normal(ks[3], (input_size, hidden1), jnp.float32) * 0.1
    b1  = jax.random.normal(ks[4], (1, hidden1), jnp.float32) * 0.1
    w2  = jax.random.normal(ks[5], (hidden1, hidden2), jnp.float32) * 0.1
    b2  = jax.random.normal(ks[6], (1, hidden2), jnp.float32) * 0.1
    wmu = jax.random.normal(ks[7], (hidden2, out_dim), jnp.float32) * 0.1
    bmu = jax.random.normal(ks[8], (1, out_dim), jnp.float32) * 0.1
    wlg = jax.random.normal(ks[9], (hidden2, out_dim), jnp.float32) * 0.1
    blg = jax.random.normal(ks[10], (1, out_dim), jnp.float32) * 0.1
    params = (emb_tables, w1, b1, w2, b2, wmu, bmu, wlg, blg)

    # Inputs.
    x_num = jax.random.normal(ks[11], (B, num_features), jnp.float32)
    x_cat = jnp.stack(
        [jax.random.randint(jax.random.fold_in(key, 100 + i), (B,), 0, m + 1)
         for i, m in enumerate(max_embedding)], axis=1).astype(jnp.int32)

    # tb=128 -> TB=128, padded batch 256, grid=(2,): exercises streaming,
    # padding, resident weights and the 2-step (both-TC) grid.
    # (Default tb=16384 is the production tile size.)
    r, p = mlprf_forward(x_num, x_cat, params, tb=128)
    jax.block_until_ready((r, p))

    # Plain-JAX f32 reference (original gather/concat path).
    cats = jnp.concatenate(
        [emb_tables[i][x_cat[:, i]] for i in range(len(emb_tables))], axis=-1)
    x = jnp.concatenate([x_num, cats], axis=-1)
    h1 = jnp.tanh(x @ w1 + b1)
    h2 = jnp.maximum(h1 @ w2 + b2, 0.0)
    r_ref = jnp.logaddexp(h2 @ wmu + bmu, 0.0)
    p_ref = h2 @ wlg + blg

    # bf16 matmul operands -> loosened tolerance vs the f32 reference.
    assert r.shape == (B, out_dim) and p.shape == (B, out_dim)
    assert jnp.allclose(r, r_ref, atol=2e-2, rtol=2e-2), "r mismatch"
    assert jnp.allclose(p, p_ref, atol=2e-2, rtol=2e-2), "p mismatch"

    print("KERNEL_OK")
</pallas_src>

<mosaic_0001>
module attributes {stable_mosaic.version = 11 : i64} {
  func.func @kernel(%arg0: i32, %arg1: memref<6x128xbf16, #tpu.memory_space<vmem>>, %arg2: memref<3x128xi32, #tpu.memory_space<vmem>>, %arg3: memref<32x6xbf16, #tpu.memory_space<vmem>>, %arg4: memref<32x18xbf16, #tpu.memory_space<vmem>>, %arg5: memref<32x1xf32, #tpu.memory_space<vmem>>, %arg6: memref<16x32xbf16, #tpu.memory_space<vmem>>, %arg7: memref<16x1xf32, #tpu.memory_space<vmem>>, %arg8: memref<4x16xbf16, #tpu.memory_space<vmem>>, %arg9: memref<4x1xf32, #tpu.memory_space<vmem>>, %arg10: memref<4x128xf32, #tpu.memory_space<vmem>>) attributes {dimension_semantics = [#tpu.dimension_semantics<parallel>], iteration_bounds = array<i64: 2>, scalar_prefetch = 0 : i64, scratch_operands = 0 : i64, tpu.core_type = #tpu.core_type<tc>, window_params = [{transform_indices = @transform_0, window_bounds = array<i64: 6, 128>}, {transform_indices = @transform_1, window_bounds = array<i64: 3, 128>}, {pipeline_mode = #tpu.pipeline_mode<synchronous>, transform_indices = @transform_2, window_bounds = array<i64: 32, 6>}, {pipeline_mode = #tpu.pipeline_mode<synchronous>, transform_indices = @transform_3, window_bounds = array<i64: 32, 18>}, {pipeline_mode = #tpu.pipeline_mode<synchronous>, transform_indices = @transform_4, window_bounds = array<i64: 32, 1>}, {pipeline_mode = #tpu.pipeline_mode<synchronous>, transform_indices = @transform_5, window_bounds = array<i64: 16, 32>}, {pipeline_mode = #tpu.pipeline_mode<synchronous>, transform_indices = @transform_6, window_bounds = array<i64: 16, 1>}, {pipeline_mode = #tpu.pipeline_mode<synchronous>, transform_indices = @transform_7, window_bounds = array<i64: 4, 16>}, {pipeline_mode = #tpu.pipeline_mode<synchronous>, transform_indices = @transform_8, window_bounds = array<i64: 4, 1>}, {transform_indices = @transform_9, window_bounds = array<i64: 4, 128>}]} {
    %c0 = arith.constant 0 : index
    %c0_0 = arith.constant 0 : index
    %0 = vector.load %arg3[%c0, %c0_0] : memref<32x6xbf16, #tpu.memory_space<vmem>>, vector<32x6xbf16>
    %c0_1 = arith.constant 0 : index
    %c0_2 = arith.constant 0 : index
    %1 = vector.load %arg1[%c0_1, %c0_2] : memref<6x128xbf16, #tpu.memory_space<vmem>>, vector<6x128xbf16>
    %cst = arith.constant dense<0.000000e+00> : vector<32x128xf32>
    %2 = tpu.matmul %0, %1, %cst {dimension_numbers = #tpu.dot_dimension_numbers<[1], [0], [0], [1], [0, 0, 1, 1], [], []>} : vector<32x6xbf16>, vector<6x128xbf16>, vector<32x128xf32> -> vector<32x128xf32>
    %c0_3 = arith.constant 0 : index
    %c0_4 = arith.constant 0 : index
    %3 = vector.load %arg2[%c0_3, %c0_4] : memref<3x128xi32, #tpu.memory_space<vmem>>, vector<3x128xi32>
    %4 = tpu.iota {dimensions = array<i32: 0>} : vector<18x128xi32>
    %5 = vector.extract_strided_slice %3 {offsets = [0, 0], sizes = [1, 128], strides = [1, 1]} : vector<3x128xi32> to vector<1x128xi32>
    %6 = vector.broadcast %5 : vector<1x128xi32> to vector<18x128xi32>
    %7 = arith.cmpi eq, %4, %6 : vector<18x128xi32>
    %8 = vector.extract_strided_slice %3 {offsets = [1, 0], sizes = [1, 128], strides = [1, 1]} : vector<3x128xi32> to vector<1x128xi32>
    %9 = vector.broadcast %8 : vector<1x128xi32> to vector<18x128xi32>
    %10 = arith.cmpi eq, %4, %9 : vector<18x128xi32>
    %11 = arith.ori %7, %10 : vector<18x128xi1>
    %12 = vector.extract_strided_slice %3 {offsets = [2, 0], sizes = [1, 128], strides = [1, 1]} : vector<3x128xi32> to vector<1x128xi32>
    %13 = vector.broadcast %12 : vector<1x128xi32> to vector<18x128xi32>
    %14 = arith.cmpi eq, %4, %13 : vector<18x128xi32>
    %15 = arith.ori %11, %14 : vector<18x128xi1>
    %16 = arith.extui %15 : vector<18x128xi1> to vector<18x128xi32>
    %17 = arith.sitofp %16 : vector<18x128xi32> to vector<18x128xf32>
    %18 = arith.truncf %17 : vector<18x128xf32> to vector<18x128xbf16>
    %c0_5 = arith.constant 0 : index
    %c0_6 = arith.constant 0 : index
    %19 = vector.load %arg4[%c0_5, %c0_6] : memref<32x18xbf16, #tpu.memory_space<vmem>>, vector<32x18xbf16>
    %cst_7 = arith.constant dense<0.000000e+00> : vector<32x128xf32>
    %20 = tpu.matmul %19, %18, %cst_7 {dimension_numbers = #tpu.dot_dimension_numbers<[1], [0], [0], [1], [0, 0, 1, 1], [], []>} : vector<32x18xbf16>, vector<18x128xbf16>, vector<32x128xf32> -> vector<32x128xf32>
    %21 = arith.addf %2, %20 : vector<32x128xf32>
    %c0_8 = arith.constant 0 : index
    %c0_9 = arith.constant 0 : index
    %22 = vector.load %arg5[%c0_8, %c0_9] : memref<32x1xf32, #tpu.memory_space<vmem>>, vector<32x1xf32>
    %23 = vector.broadcast %22 : vector<32x1xf32> to vector<32x128xf32>
    %24 = arith.addf %21, %23 : vector<32x128xf32>
    %25 = math.tanh %24 : vector<32x128xf32>
    %c0_10 = arith.constant 0 : index
    %c0_11 = arith.constant 0 : index
    %26 = vector.load %arg6[%c0_10, %c0_11] : memref<16x32xbf16, #tpu.memory_space<vmem>>, vector<16x32xbf16>
    %27 = arith.truncf %25 : vector<32x128xf32> to vector<32x128xbf16>
    %cst_12 = arith.constant dense<0.000000e+00> : vector<16x128xf32>
    %28 = tpu.matmul %26, %27, %cst_12 {dimension_numbers = #tpu.dot_dimension_numbers<[1], [0], [0], [1], [0, 0, 1, 1], [], []>} : vector<16x32xbf16>, vector<32x128xbf16>, vector<16x128xf32> -> vector<16x128xf32>
    %c0_13 = arith.constant 0 : index
    %c0_14 = arith.constant 0 : index
    %29 = vector.load %arg7[%c0_13, %c0_14] : memref<16x1xf32, #tpu.memory_space<vmem>>, vector<16x1xf32>
    %30 = vector.broadcast %29 : vector<16x1xf32> to vector<16x128xf32>
    %31 = arith.addf %28, %30 : vector<16x128xf32>
    %cst_15 = arith.constant 0.000000e+00 : f32
    %32 = vector.broadcast %cst_15 : f32 to vector<16x128xf32>
    %33 = arith.maximumf %31, %32 : vector<16x128xf32>
    %c0_16 = arith.constant 0 : index
    %c0_17 = arith.constant 0 : index
    %34 = vector.load %arg8[%c0_16, %c0_17] : memref<4x16xbf16, #tpu.memory_space<vmem>>, vector<4x16xbf16>
    %35 = arith.truncf %33 : vector<16x128xf32> to vector<16x128xbf16>
    %cst_18 = arith.constant dense<0.000000e+00> : vector<4x128xf32>
    %36 = tpu.matmul %34, %35, %cst_18 {dimension_numbers = #tpu.dot_dimension_numbers<[1], [0], [0], [1], [0, 0, 1, 1], [], []>} : vector<4x16xbf16>, vector<16x128xbf16>, vector<4x128xf32> -> vector<4x128xf32>
    %c0_19 = arith.constant 0 : index
    %c0_20 = arith.constant 0 : index
    %37 = vector.load %arg9[%c0_19, %c0_20] : memref<4x1xf32, #tpu.memory_space<vmem>>, vector<4x1xf32>
    %38 = vector.broadcast %37 : vector<4x1xf32> to vector<4x128xf32>
    %39 = arith.addf %36, %38 : vector<4x128xf32>
    %40 = tpu.iota {dimensions = array<i32: 0>} : vector<4x128xi32>
    %c2_i32 = arith.constant 2 : i32
    %41 = vector.broadcast %c2_i32 : i32 to vector<4x128xi32>
    %42 = arith.cmpi slt, %40, %41 : vector<4x128xi32>
    %cst_21 = arith.constant 0.000000e+00 : f32
    %43 = vector.broadcast %cst_21 : f32 to vector<4x128xf32>
    %44 = arith.maximumf %39, %43 : vector<4x128xf32>
    %45 = vector.broadcast %cst_21 : f32 to vector<4x128xf32>
    %46 = arith.subf %39, %45 : vector<4x128xf32>
    %47 = arith.cmpf one, %46, %46 : vector<4x128xf32>
    %48 = vector.broadcast %cst_21 : f32 to vector<4x128xf32>
    %49 = arith.addf %39, %48 : vector<4x128xf32>
    %50 = math.absf %46 : vector<4x128xf32>
    %cst_22 = arith.constant 0.000000e+00 : f32
    %51 = vector.broadcast %cst_22 : f32 to vector<4x128xf32>
    %52 = arith.subf %51, %50 : vector<4x128xf32>
    %53 = math.exp %52 : vector<4x128xf32>
    %54 = math.log1p %53 : vector<4x128xf32>
    %55 = arith.addf %44, %54 : vector<4x128xf32>
    %56 = arith.select %47, %49, %55 : vector<4x128xi1>, vector<4x128xf32>
    %57 = arith.select %42, %56, %39 : vector<4x128xi1>, vector<4x128xf32>
    %c0_23 = arith.constant 0 : index
    %c0_24 = arith.constant 0 : index
    %58 = vector.load %arg10[%c0_23, %c0_24] : memref<4x128xf32, #tpu.memory_space<vmem>>, vector<4x128xf32>
    tpu.vector_store %arg10[%c0_23, %c0_24], %57 {strides = array<i32>} : memref<4x128xf32, #tpu.memory_space<vmem>>, vector<4x128xf32>,
    return
  }
  func.func @transform_0(%arg0: i32) -> (i32, i32) {
    %c0_i32 = arith.constant 0 : i32
    %c0_i32_0 = arith.constant 0 : i32
    return %c0_i32, %arg0 : i32, i32
  }
  func.func @transform_1(%arg0: i32) -> (i32, i32) {
    %c0_i32 = arith.constant 0 : i32
    %c0_i32_0 = arith.constant 0 : i32
    return %c0_i32, %arg0 : i32, i32
  }
  func.func @transform_2(%arg0: i32) -> (i32, i32) {
    %c0_i32 = arith.constant 0 : i32
    %c0_i32_0 = arith.constant 0 : i32
    %c0_i32_1 = arith.constant 0 : i32
    return %c0_i32, %c0_i32_0 : i32, i32
  }
  func.func @transform_3(%arg0: i32) -> (i32, i32) {
    %c0_i32 = arith.constant 0 : i32
    %c0_i32_0 = arith.constant 0 : i32
    %c0_i32_1 = arith.constant 0 : i32
    return %c0_i32, %c0_i32_0 : i32, i32
  }
  func.func @transform_4(%arg0: i32) -> (i32, i32) {
    %c0_i32 = arith.constant 0 : i32
    %c0_i32_0 = arith.constant 0 : i32
    %c0_i32_1 = arith.constant 0 : i32
    return %c0_i32, %c0_i32_0 : i32, i32
  }
  func.func @transform_5(%arg0: i32) -> (i32, i32) {
    %c0_i32 = arith.constant 0 : i32
    %c0_i32_0 = arith.constant 0 : i32
    %c0_i32_1 = arith.constant 0 : i32
    return %c0_i32, %c0_i32_0 : i32, i32
  }
  func.func @transform_6(%arg0: i32) -> (i32, i32) {
    %c0_i32 = arith.constant 0 : i32
    %c0_i32_0 = arith.constant 0 : i32
    %c0_i32_1 = arith.constant 0 : i32
    return %c0_i32, %c0_i32_0 : i32, i32
  }
  func.func @transform_7(%arg0: i32) -> (i32, i32) {
    %c0_i32 = arith.constant 0 : i32
    %c0_i32_0 = arith.constant 0 : i32
    %c0_i32_1 = arith.constant 0 : i32
    return %c0_i32, %c0_i32_0 : i32, i32
  }
  func.func @transform_8(%arg0: i32) -> (i32, i32) {
    %c0_i32 = arith.constant 0 : i32
    %c0_i32_0 = arith.constant 0 : i32
    %c0_i32_1 = arith.constant 0 : i32
    return %c0_i32, %c0_i32_0 : i32, i32
  }
  func.func @transform_9(%arg0: i32) -> (i32, i32) {
    %c0_i32 = arith.constant 0 : i32
    %c0_i32_0 = arith.constant 0 : i32
    return %c0_i32, %arg0 : i32, i32
  }
}

</mosaic_0001>

<bundles_post_ra>
// kernel: tpu_custom_call.1
= control target key start
LH: loop header
LB: loop body
LE: loop exit
PB: predicated region body
PF: predicated region fallthrough
CT: control target
= control target key end

     0   :  { %14 = vsyncpa [#allocation3], 0  ;;  %s1030_s0 = inlined_call_operand.vmem [shape: bf16[6,256], index: 0, kind: input, shape index: {}]   ;;  %s1031_s1 = inlined_call_operand.vmem [shape: s32[3,256], index: 1, kind: input, shape index: {}]   ;;  %s1032_s2 = inlined_call_operand.vmem [shape: bf16[32,6], index: 2, kind: input, shape index: {}]   ;;  %s1033_s3 = inlined_call_operand.vmem [shape: bf16[32,18], index: 3, kind: input, shape index: {}]   ;;  %s1034_s4 = inlined_call_operand.vmem [shape: f32[32,1], index: 4, kind: input, shape index: {}]   ;;  %s1035_s5 = inlined_call_operand.vmem [shape: bf16[16,32], index: 5, kind: input, shape index: {}]   ;;  %s1036_s6 = inlined_call_operand.vmem [shape: f32[16,1], index: 6, kind: input, shape index: {}]   ;;  %s1037_s7 = inlined_call_operand.vmem [shape: bf16[4,16], index: 7, kind: input, shape index: {}]   ;;  %s1038_s8 = inlined_call_operand.vmem [shape: f32[4,1], index: 8, kind: input, shape index: {}]   ;;  %s1039_s9 = inlined_call_operand.hbm [shape: f32[4,256], index: 9, kind: output, shape index: {}]  }
   0x1   :  { %16 = vsyncpa [#allocation3 + $0x1], 0  ;;  %s893_s30 = smov 0   ;;  %s895_s10 = smov 0  }
   0x2   :  { %s897_s11 = smov 0   ;;  %s899_s12 = smov 0  }
   0x3 LB: > { %s914_s13 = sadd.s32 4294967295, %s838_s12   ;;  %s672_s14 = sadd.s32 4294967294, %s838_s12   ;;  %s838_s12 = sphi %s899_s12, %s1045_s12   ;;  %s834_s11 = sphi %s897_s11, %s1044_s11   ;;  %s830_s10 = sphi %s895_s10, %s1043_s10   ;;  %s826_s30 = sphi %s893_s30, %s1042_s30  }
   0x4   : > { %s918_s15 = sadd.s32 1, %s838_s12   ;;  %s228_s16 = sadd.s32 1, %s834_s11 }
   0x5   : > { %s225_s17 = ssub.s32 %s838_s12, %s918_s15  ;;  %p238_p0 = scmp.ne.s32.totalorder %s834_s11, %s830_s10 }
   0x6   : > { %p226_p1 = scmp.eq.s32.totalorder %s225_s17, 0  ;;  %p239_p2 = scmp.eq.s32.totalorder %s914_s13, 1 }
   0x7   : > { %p244_p3 = scmp.ne.s32.totalorder %s830_s10, %s826_s30  ;;  %p245_p4 = scmp.eq.s32.totalorder %s672_s14, 1 }
   0x8   : > { %s929_s18 = scalar_select %p226_p1, %s834_s11, %s228_s16  }
   0x9   : > { %p931_p5 = por %p239_p2, %p238_p0  ;;  %p935_p6 = por %p245_p4, %p244_p3 }
   0xa   : > { %p675_p7 = scmp.ge.s32.totalorder %s838_s12, 1  ;;  %p298_p8 = scmp.lt.s32.totalorder %s838_s12, 3 }
   0xc   : > { %p299_p9 = pnand %p675_p7, %p298_p8 }
   0xd   : > { %p337_p10 = scmp.lt.s32.totalorder (!%p299_p9), %s914_s13, 1  ;;  %s334_s16 = sand.u32 (!%p299_p9), 1, %s830_s10  }
   0xe   : > { %302 = sbr.rel (%p299_p9) target bundleno = 526 (0x20e), region = 56 }
  0x13   : > { %v352_v0 = vlaneseq  ;;  %s338_s21 = scalar_select %p337_p10, %s914_s13, 1  ;;  %v840_v2 = vmov 0   ;;  %v468_v3 = vld [vmem:[%s1034_s4 + $0x10] sm:$0xff]  ;;  %v466_v4 = vld [vmem:[%s1034_s4] sm:$0xff]  ;;  %vm443_vm0 = vcmask 1042432   ;;  %vm436_vm1 = vcmask 48128  }
  0x14   : > { %762 = vset.pattern.permute.xlu1 %v840_v2  ;;  %761 = vset.pattern.permute.xlu0 %v840_v2  ;;  %v714_v13 = vld [vmem:[%s1032_s2] sm:$0xff]  ;;  %v469_v14 = vld [vmem:[%s1034_s4 + $0x18] sm:$0xff]  ;;  %v467_v15 = vld [vmem:[%s1034_s4 + $0x8] sm:$0xff]  ;;  %v841_v16 = vmov 0.0   ;;  %vm403_vm12 = vcmask 1040384  }
  0x15   : > { %v943_v1 = vshrl.u32 %v352_v0, 7  ;;  %482 = vperm.xlu0 %761, %v468_v3   ;;  %472 = vperm.xlu1 %762, %v466_v4   ;;  %s677_s26 = sshll.u32 %s338_s21, 2  ;;  %v541_v20 = vld [vmem:[%s1038_s8] sm:$0xf]  ;;  %v842_v22 = vmov 1.0|1.0  }
  0x16   : > { %763 = vset.pattern.permute.xlu2 %v840_v2  ;;  %s340_s29 = scalar_lea.vmem %s1030_s0, %s677_s26  ;;  %s344_s17 = scalar_lea.vmem %s1031_s1, %s677_s26  ;;  %v716_v21 = vld [vmem:[%s1033_s3] sm:$0xff]  ;;  %v715_v23 = vld [vmem:[%s1032_s2 + $0x8] sm:$0xff] }
  0x17   : > { %v355_v5 = vadd.s32 16, %v943_v1  ;;  %v350_v6 = vld [vmem:[%s340_s29] sm:$0x7]  ;;  %v354_v8 = vadd.s32 8, %v943_v1  ;;  %v717_v24 = vld [vmem:[%s1033_s3 + $0x8] sm:$0xff]  ;;  %s711_s21 = sshll.u32 %s914_s13, 2 }
  0x18   : > { %v351_v7 = vld [vmem:[%s344_s17] sm:$0x7]  ;;  %v445_v12 = vsel %vm443_vm0, %v350_v6, 0  ;;  %v503_v34 = vld [vmem:[%s1036_s6 + $0x8] sm:$0xff]  ;;  %s676_s17 = sshll.u32 %s334_s16, 2  ;;  %s596_s24 = scalar_lea.hbm %s1039_s9, %s711_s21 }
  0x19   : > { %v356_v9 = vperm.slane %v351_v7, 0  ;;  %v360_v10 = vperm.slane %v351_v7, 1  ;;  %v367_v11 = vperm.slane %v351_v7, 2  ;;  %454 = vmatpush.bf16.msra.mxu1 %v445_v12  ;;  %v502_v30 = vld [vmem:[%s1036_s6] sm:$0xff]  ;;  %s336_s25 = scalar_lea.vmem [#allocation2], %s676_s17  ;;  %s600_s27 = sshll.u32 %s596_s24, 4  ;;  %s601_s27 = int_to_ptr.hbm [resolvable:$true] %s600_s27 }
  0x1a   : > { %506 = vperm.xlu2 %763, %v502_v30   ;;  %v718_v53 = vld [vmem:[%s1035_s5] sm:$0xff]  ;;  %s598_s26 = sshll.u32 %s336_s25, 4  ;;  %s586_s13 = scalar_lea.sflag [#allocation3], %s334_s16  ;;  %s599_s26 = int_to_ptr.vmem [resolvable:$true] %s598_s26 }
  0x1b   : > { %vm359_vm2 = vcmp.eq.s32.totalorder %v355_v5, %v356_v9  ;;  %vm363_vm3 = vcmp.eq.s32.totalorder %v355_v5, %v360_v10  ;;  %vm370_vm4 = vcmp.eq.s32.totalorder %v355_v5, %v367_v11  ;;  %vm357_vm5 = vcmp.eq.s32.totalorder %v943_v1, %v356_v9  ;;  %v539_v63 = vld [vmem:[%s1037_s7] sm:$0x3]  ;;  %s790_s28 = sshra.s32 %s601_s27, 4  ;;  %s796_s21 = scalar_lea.hbm %s1039_s9, 8  ;;  %s791_s28 = int_to_ptr.hbm [resolvable:$true] %s790_s28 }
  0x1c   : > { %vm366_vm6 = vmor %vm359_vm2, %vm363_vm3  ;;  %vm358_vm7 = vcmp.eq.s32.totalorder %v354_v8, %v356_v9  ;;  %vm361_vm8 = vcmp.eq.s32.totalorder %v943_v1, %v360_v10  ;;  %vm362_vm9 = vcmp.eq.s32.totalorder %v354_v8, %v360_v10  ;;  %702 = vmatmul.msk.bf16.vlgmr.msra.gmra.mxu1 %vm436_vm1, %v714_v13  ;;  %vm368_vm11 = vcmp.eq.s32.totalorder %v943_v1, %v367_v11  ;;  %s792_s29 = scalar_lea.hbm %s791_s28, 4  ;;  %p797_p0 = scmp.lt.s32.totalorder %s791_s28, %s1039_s9 }
  0x1d   : > { %vm373_vm10 = vmor %vm366_vm6, %vm370_vm4  ;;  %487 = vperm.xlu0 %761, %v469_v14   ;;  %vm369_vm14 = vcmp.eq.s32.totalorder %v354_v8, %v367_v11  ;;  %477 = vperm.xlu1 %762, %v467_v15   ;;  %vm396_vm4 = vcmask 146432   ;;  %p793_p11 = scmp.ne.s32.totalorder %s791_s28, %s792_s29  ;;  %p798_p1 = scmp.lt.s32.totalorder %s796_s21, %s792_s29 }
  0x1e   : > { %v681_v17 = vsel %vm373_vm10, 1.0, %v841_v16  ;;  %vm364_vm13 = vmor %vm357_vm5, %vm361_vm8  ;;  %vm547_vm5 = vcmask 130048  }
  0x1f   : > { %v381_v18 = vpack.c.bf16 %v681_v17, %v681_v17  ;;  %vm365_vm15 = vmor %vm358_vm7, %vm362_vm9  ;;  %vm564_vm7 = vcmp.lt.s32.totalorder %v943_v1, 2  ;;  %p794_p12 = pnand %p793_p11, %p931_p5  ;;  %p799_p2 = por %p798_p1, %p797_p0 }
  0x20   : > { %vm371_vm0 = vmor %vm364_vm13, %vm368_vm11 }
  0x21   : > { %v405_v19 = vsel %vm403_vm12, %v381_v18, 0  ;;  %vm372_vm2 = vmor %vm365_vm15, %vm369_vm14  ;;  %p795_p13 = pneg %p794_p12 }
  0x22   : > { %413 = vmatpush.bf16.msra.mxu0 %v405_v19  ;;  %vm690_vm3 = vmpackc.low %vm372_vm2, %vm371_vm0  ;;  %511 = vperm.xlu2 %763, %v503_v34  }
  0x23   : > { %p800_p3 = pnand %p799_p2, %p795_p13 }
  0x25   : > { %544 = vperm.xlu0 %761, %v541_v20  }
  0x26   : > { %691 = vmatpush.bf16.msk.msra.mxu0 %vm690_vm3, %v842_v22 }
  0x29   : > { %692 = vmatmul.msk.bf16.vlgmr.msra.gmra.mxu0 %vm396_vm4, %v716_v21 }
  0x2c   : > { %703 = vmatmul.msk.bf16.gmra.mxu1 %vm436_vm1, %v715_v23  ;;  %vm519_vm1 = vcmask 261120  }
  0x39   : > { %693 = vmatmul.msk.bf16.gmra.mxu0 %vm396_vm4, %v717_v24 }
  0x74   : > { %v507_v54 = vpop.permute.xlu2 %506 }
  0x7c   : > { %v512_v57 = vpop.permute.xlu2 %511 }
  0x87   : > { %v473_v29 = vpop.permute.xlu1 %472  ;;  %v483_v32 = vpop.permute.xlu0 %482 }
  0x8f   : > { %v478_v37 = vpop.permute.xlu1 %477  ;;  %v488_v43 = vpop.permute.xlu0 %487 }
  0x97   : > { %v545_v0 = vpop.permute.xlu0 %544 }
  0x99   : > { %v456_v25 = vpop.f32.mrf.mxu1 }
  0xa1   : > { %v458_v27 = vpop.f32.mrf.mxu1 }
  0xa6   : > { %v416_v26 = vpop.f32.mrf.mxu0 }
  0xa7   : > { %v457_v41 = vadd.f32 %v456_v25, %v416_v26 }
  0xa9   : > { %v461_v31 = vpop.f32.mrf.mxu1  ;;  %v490_v46 = vadd.f32 %v473_v29, %v457_v41 }
  0xae   : > { %v418_v28 = vpop.f32.mrf.mxu0 }
  0xaf   : > { %v459_v36 = vadd.f32 %v458_v27, %v418_v28 }
  0xb1   : > { %v463_v39 = vpop.f32.mrf.mxu1  ;;  %v491_v44 = vadd.f32 %v478_v37, %v459_v36 }
  0xb6   : > { %v421_v33 = vpop.f32.mrf.mxu0 }
  0xb7   : > { %v462_v35 = vadd.f32 %v461_v31, %v421_v33 }
  0xb9   : > { %v492_v38 = vadd.f32 %v483_v32, %v462_v35 }
  0xbb   : > { %764 = vtanh.f32 %v492_v38 }
  0xbe   : > { %v423_v40 = vpop.f32.mrf.mxu0 }
  0xbf   : > { %v464_v42 = vadd.f32 %v463_v39, %v423_v40 }
  0xc1   : > { %v493_v45 = vadd.f32 %v488_v43, %v464_v42  ;;  %v765_v47 = vpop.eup %764 }
  0xc3   : > { %766 = vtanh.f32 %v493_v45 }
  0xc4   : > { %768 = vtanh.f32 %v491_v44 }
  0xc5   : > { %770 = vtanh.f32 %v490_v46 }
  0xc9   : > { %v767_v48 = vpop.eup %766 }
  0xca   : > { %v501_v49 = vpack.c.bf16 %v767_v48, %v765_v47  ;;  %v769_v50 = vpop.eup %768 }
  0xcb   : > { %v771_v51 = vpop.eup %770 }
  0xcc   : > { %529 = vmatpush.bf16.msra.mxu2 %v501_v49  ;;  %v500_v52 = vpack.c.bf16 %v769_v50, %v771_v51 }
  0xd0   : > { %530 = vmatpush.bf16.msra.mxu2 %v500_v52 }
  0xd3   : > { %708 = vmatmul.msk.bf16.vlgmr.msra.gmra.mxu2 %vm519_vm1, %v718_v53 }
 0x156   : > { %v532_v55 = vpop.f32.mrf.mxu2 }
 0x157   : > { %v533_v56 = vadd.f32 %v532_v55, %v507_v54 }
 0x159   : > { %v537_v60 = vmax.f32 %v533_v56, 0.0 }
 0x15e   : > { %v534_v58 = vpop.f32.mrf.mxu2 }
 0x15f   : > { %v535_v59 = vadd.f32 %v534_v58, %v512_v57 }
 0x161   : > { %v538_v61 = vmax.f32 %v535_v59, 0.0 }
 0x163   : > { %v540_v62 = vpack.c.bf16 %v538_v61, %v537_v60 }
 0x165   : > { %558 = vmatpush.bf16.msra.mxu3 %v540_v62 }
 0x168   : > { %709 = vmatmul.msk.bf16.vlgmr.msra.gmra.mxu3 %vm547_vm5, %v539_v63 }
 0x1eb   : > { %v560_v2 = vpop.f32.mrf.mxu3 }
 0x1ec   : > { %v561_v3 = vadd.f32 %v560_v2, %v545_v0 }
 0x1ee   : > { %v568_v4 = vand.u32 2147483647, %v561_v3  ;;  %v565_v16 = vmax.f32 %v561_v3, 0.0  ;;  %vm566_vm8 = vcmp.ne.f32.partialorder %v561_v3, %v561_v3 }
 0x1f0   : > { %v569_v5 = vsub.f32 0.0, %v568_v4 }
 0x1f2   : > { %v570_v6 = vmul.f32 1.442695, %v569_v5 }
 0x1f3   : > { %v562_v7 = vpop.f32.mrf.mxu3 }
 0x1f4   : > { %772 = vpow2.f32 %v570_v6 }
 0x1fa   : > { %v773_v8 = vpop.eup %772 }
 0x1fb   : > { %v572_v9 = vadd.f32 1.0, %v773_v8  ;;  %v575_v10 = vmul.f32 -0.5, %v773_v8  ;;  %v578_v12 = vand.u32 2147483647, %v773_v8 }
 0x1fd   : > { %774 = vlog2.f32 %v572_v9  ;;  %v576_v11 = vadd.f32 1.0, %v575_v10  ;;  %vm579_vm6 = vcmp.lt.f32.partialorder %v578_v12, 0.0004427343 }
 0x1ff   : > { %v577_v15 = vmul.f32 %v773_v8, %v576_v11 }
 0x203   : > { %v775_v13 = vpop.eup %774 }
 0x204   : > { %v574_v14 = vmul.f32 0.6931472, %v775_v13 }
 0x206   : > { %v580_v17 = vsel %vm579_vm6, %v577_v15, %v574_v14 }
 0x207   : > { %v581_v18 = vadd.f32 %v580_v17, %v565_v16 }
 0x209   : > { %v582_v19 = vsel %vm566_vm8, %v561_v3, %v581_v18 }
 0x20a   : > { %v583_v20 = vsel %vm564_vm7, %v582_v19, %v561_v3 }
 0x20b   : > { %584 = vst [vmem:[%s336_s25] sm:$0xf] %v583_v20 }
 0x20c   : > { %803 = shalt.err (!%p800_p3)
}
 0x20d   : > { %719 = dma.vmem_to_hbm [thread:$0]  (%p931_p5), %s599_s26, 64, %s601_s27, %s586_s13  }
 0x20e PF: > { %p725_p4 = scmp.ge.s32.totalorder %s838_s12, 2  ;;  %s612_s16 = sand.u32 1, %s826_s30  }
 0x20f   : > { %s613_s24 = scalar_lea.sflag [#allocation3], %s612_s16 }
 0x210   : > { %p722_p7 = pnand %p725_p4, %p935_p6 }
 0x212   : > { %p723_p8 = pneg %p722_p7 }
 0x214   : > { %821 = dma.done.wait (%p723_p8), %s613_s24, 64  }
 0x215   : > { %823 = vsyncadd (%p723_p8), %s613_s24, 4294967232  ;;  %p19_p9 = scmp.ge.s32.totalorder %s918_s15, 4   ;;  %s1042_s30 = smov %s830_s10 }
 0x216   : > { %s1043_s10 = smov %s834_s11  ;;  %s1044_s11 = smov %s929_s18 }
 0x217   : > { %s1045_s12 = smov %s918_s15  ;;  %21 = sbr.rel (!%p19_p9) target bundleno = 3 (0x3), region = 94 }
 0x21c   :  { %619 = vsyncpa [#allocation3], 1 }
 0x21d   :  { %621 = vsyncpa [#allocation3 + $0x1], 1 }

</bundles_post_ra>
